<compile_context>
chip_gen: v5e
topology: v5e:2x2
jax: 0.10.0
libtpu: 0.0.40
codegen_flags: <defaults>
</compile_context>

<pallas_src>
import functools

import jax
import jax.numpy as jnp
from jax import lax
from jax.experimental import pallas as pl
from jax.experimental.pallas import tpu as pltpu

_F32_TEMPS = 4  # d + two rolled/shifted copies + fused accumulator (all f32)
_VMEM_BUDGET = 28 << 20          # accounted in-flight bytes per grid step
_VMEM_LIMIT = 48 * 1024 * 1024   # safe on v7x (64 MiB physical), ample on v5e/v6e


def _round_up(x, m):
    return -(-x // m) * m


# ----------------------------------------------------------------------------
# Kernels
# ----------------------------------------------------------------------------
def _recons_flat_kernel(out_ref, in_ref, part_ref, *, img_w, hw, edge_recons,
                        nc_total, block_rows, mask_tail,
                        inv_c, inv_gx, inv_gy):
    """Lane-dense path: blocks are (block_rows, H*W)."""
    d = out_ref[...].astype(jnp.float32) - in_ref[...].astype(jnp.float32)

    if mask_tail:
        # Zero rows past NC in the clamped last tile (where() is NaN/garbage safe).
        base = pl.program_id(0) * block_rows
        rows = lax.broadcasted_iota(jnp.int32, (block_rows, 1), 0)
        d = jnp.where(rows < (nc_total - base), d, 0.0)

    acc = d * d * inv_c

    if edge_recons:
        # Flat position f = h*W + w.  Gradients via lane rolls (XLU) + masks:
        #   gy[f] = d[f] - d[f-1]  valid iff f % W != 0   (W-direction diff)
        #   gx[f] = d[f] - d[f-W]  valid iff f >= W       (H-direction diff)
        flat = lax.broadcasted_iota(jnp.int32, (1, hw), 1)
        wy = jnp.where((flat % img_w) != 0, inv_gy, 0.0)   # (1, HW) f32 weight
        wx = jnp.where(flat >= img_w, inv_gx, 0.0)
        gy = d - pltpu.roll(d, shift=1, axis=1)
        gx = d - pltpu.roll(d, shift=img_w, axis=1)
        acc = acc + gx * gx * wx + gy * gy * wy

    s = jnp.sum(acc)  # single fused reduction per tile
    part_ref[...] = jnp.broadcast_to(s.astype(jnp.float32), part_ref.shape)


def _recons_3d_kernel(out_ref, in_ref, part_ref, *, edge_recons,
                      nc_total, block_rows, mask_tail,
                      inv_c, inv_gx, inv_gy):
    """Fallback path: blocks are (block_rows, H, W); W already lane-aligned or odd."""
    d = out_ref[...].astype(jnp.float32) - in_ref[...].astype(jnp.float32)

    if mask_tail:
        base = pl.program_id(0) * block_rows
        rows = lax.broadcasted_iota(jnp.int32, (block_rows, 1, 1), 0)
        d = jnp.where(rows < (nc_total - base), d, 0.0)

    s = jnp.sum(d * d) * inv_c
    if edge_recons:
        gx = d[:, 1:, :] - d[:, :-1, :]   # gradient along H (sublane axis)
        gy = d[:, :, 1:] - d[:, :, :-1]   # gradient along W (lane axis)
        s = s + jnp.sum(gx * gx) * inv_gx + jnp.sum(gy * gy) * inv_gy

    part_ref[...] = jnp.broadcast_to(s.astype(jnp.float32), part_ref.shape)


# ----------------------------------------------------------------------------
# Tile sizing (padded-footprint accounting per the review)
# ----------------------------------------------------------------------------
def _pick_block_rows_flat(nc, hw, itemsize, budget_bytes=_VMEM_BUDGET):
    """Rows (images) per tile for the (NC, H*W) layout."""
    lanes = _round_up(hw, 128)
    # 2 inputs x 2 pipeline buffers of the input dtype + f32 temporaries.
    bytes_per_row = lanes * (2 * 2 * itemsize + _F32_TEMPS * 4)
    bc = max(1, budget_bytes // bytes_per_row)
    bc = min(bc, nc)
    if bc > 8:
        bc = (bc // 8) * 8   # keep the sublane axis aligned
    return int(bc)


def _pick_block_rows_3d(nc, h, w, itemsize, budget_bytes=_VMEM_BUDGET):
    """Images per tile for the (NC, H, W) layout (per-image padded footprint)."""
    rows = _round_up(h, 8)
    lanes = _round_up(w, 128)
    bytes_per_img = rows * lanes * (2 * 2 * itemsize + _F32_TEMPS * 4)
    bc = max(1, budget_bytes // bytes_per_img)
    return int(min(bc, nc))


# ----------------------------------------------------------------------------
# Wrapper
# ----------------------------------------------------------------------------
def recons_loss_x(out, input_i, edge_recons=True, block_rows=None):
    """Pallas TPU implementation of ReconsLossX.forward (returns scalar f32)."""
    if out.shape != input_i.shape or out.ndim != 4:
        raise ValueError("expected matching NCHW inputs")
    N, C, H, W = out.shape
    if edge_recons and (H < 2 or W < 2):
        # Guard: PyTorch's mean over an empty gradient tensor is NaN; refuse here.
        raise ValueError("edge_recons=True requires H >= 2 and W >= 2")

    NC = N * C
    HW = H * W

    inv_c = 1.0 / float(NC * H * W)
    inv_gx = 1.0 / float(NC * (H - 1) * W) if edge_recons else 0.0
    inv_gy = 1.0 / float(NC * H * (W - 1)) if edge_recons else 0.0

    itemsize = jnp.dtype(out.dtype).itemsize

    # Flat lane-dense path only pays off when W itself isn't lane-aligned, and is
    # only used when the resulting block keeps the (8, 128) alignment rule.
    use_flat = (HW % 128 == 0) and (W % 128 != 0)
    if use_flat:
        bc = block_rows if block_rows is not None else _pick_block_rows_flat(NC, HW, itemsize)
        bc = int(max(1, min(bc, NC)))
        if bc != NC and bc % 8 != 0:
            use_flat = False

    if use_flat:
        x = out.reshape(NC, HW)
        y = input_i.reshape(NC, HW)
        grid = pl.cdiv(NC, bc)
        mask_tail = (NC % bc) != 0
        kernel = functools.partial(
            _recons_flat_kernel, img_w=W, hw=HW, edge_recons=edge_recons,
            nc_total=NC, block_rows=bc, mask_tail=mask_tail,
            inv_c=inv_c, inv_gx=inv_gx, inv_gy=inv_gy)
        in_specs = [pl.BlockSpec((bc, HW), lambda i: (i, 0)),
                    pl.BlockSpec((bc, HW), lambda i: (i, 0))]
    else:
        bc = block_rows if block_rows is not None else _pick_block_rows_3d(NC, H, W, itemsize)
        bc = int(max(1, min(bc, NC)))
        x = out.reshape(NC, H, W)
        y = input_i.reshape(NC, H, W)
        grid = pl.cdiv(NC, bc)
        mask_tail = (NC % bc) != 0
        kernel = functools.partial(
            _recons_3d_kernel, edge_recons=edge_recons,
            nc_total=NC, block_rows=bc, mask_tail=mask_tail,
            inv_c=inv_c, inv_gx=inv_gx, inv_gy=inv_gy)
        in_specs = [pl.BlockSpec((bc, H, W), lambda i: (i, 0, 0)),
                    pl.BlockSpec((bc, H, W), lambda i: (i, 0, 0))]

    partials = pl.pallas_call(
        kernel,
        grid=(int(grid),),
        in_specs=in_specs,
        out_specs=pl.BlockSpec((1, 8, 128), lambda i: (i, 0, 0)),
        out_shape=jax.ShapeDtypeStruct((int(grid), 8, 128), jnp.float32),
        compiler_params=pltpu.CompilerParams(
            dimension_semantics=("parallel",),
            vmem_limit_bytes=_VMEM_LIMIT,
        ),
    )(x, y)

    # Tiny cross-tile reduction (one value per grid step) in plain JAX.
    return jnp.sum(partials[:, 0, 0])


# ----------------------------------------------------------------------------
# Pure-JAX reference (mirrors the PyTorch module)
# ----------------------------------------------------------------------------
def _reference_loss(out, input_i, edge_recons=True):
    out = out.astype(jnp.float32)
    input_i = input_i.astype(jnp.float32)
    content = jnp.mean((out - input_i) ** 2)
    if not edge_recons:
        return content
    gx_o = out[..., 1:, :] - out[..., :-1, :]
    gy_o = out[..., 1:] - out[..., :-1]
    gx_i = input_i[..., 1:, :] - input_i[..., :-1, :]
    gy_i = input_i[..., 1:] - input_i[..., :-1]
    return content + jnp.mean((gx_o - gx_i) ** 2) + jnp.mean((gy_o - gy_i) ** 2)


if __name__ == "__main__":
    key = jax.random.PRNGKey(0)
    k1, k2, k3, k4 = jax.random.split(key, 4)

    # Spec shape: batch=2, channels=4, spatial 16x16 (NCHW) -> flat lane-dense path.
    out = jax.random.normal(k1, (2, 4, 16, 16), dtype=jnp.float32)
    input_i = jax.random.normal(k2, (2, 4, 16, 16), dtype=jnp.float32)

    ref = jax.block_until_ready(_reference_loss(out, input_i, edge_recons=True))
    loss_auto = jax.block_until_ready(recons_loss_x(out, input_i, edge_recons=True))
    assert jnp.allclose(loss_auto, ref, rtol=1e-5, atol=1e-5), (loss_auto, ref)

    # edge_recons=False branch.
    loss_ne = jax.block_until_ready(recons_loss_x(out, input_i, edge_recons=False))
    ref_ne = jax.block_until_ready(_reference_loss(out, input_i, edge_recons=False))
    assert jnp.allclose(loss_ne, ref_ne, rtol=1e-5, atol=1e-5), (loss_ne, ref_ne)

    # bf16 inputs exercise mixed-precision accumulation on the flat path.
    ob, ib = out.astype(jnp.bfloat16), input_i.astype(jnp.bfloat16)
    loss_bf = jax.block_until_ready(recons_loss_x(ob, ib, edge_recons=True))
    ref_bf = jax.block_until_ready(_reference_loss(ob, ib, edge_recons=True))
    assert jnp.allclose(loss_bf, ref_bf, rtol=1e-4, atol=1e-4), (loss_bf, ref_bf)

    # Multi-tile flat path, divisible grid: NC=24, block_rows=8 -> grid=3.
    o24 = jax.random.normal(k3, (4, 6, 16, 16), dtype=jnp.float32)
    i24 = jax.random.normal(jax.random.fold_in(k3, 1), (4, 6, 16, 16), dtype=jnp.float32)
    loss_24 = jax.block_until_ready(recons_loss_x(o24, i24, edge_recons=True, block_rows=8))
    ref_24 = jax.block_until_ready(_reference_loss(o24, i24, edge_recons=True))
    assert jnp.allclose(loss_24, ref_24, rtol=1e-5, atol=1e-5), (loss_24, ref_24)

    # Multi-tile flat path with a non-dividing grid (tail mask): NC=9, block_rows=8.
    o9 = jax.random.normal(k4, (3, 3, 16, 16), dtype=jnp.float32)
    i9 = jax.random.normal(jax.random.fold_in(k4, 1), (3, 3, 16, 16), dtype=jnp.float32)
    loss_9 = jax.block_until_ready(recons_loss_x(o9, i9, edge_recons=True, block_rows=8))
    ref_9 = jax.block_until_ready(_reference_loss(o9, i9, edge_recons=True))
    assert jnp.allclose(loss_9, ref_9, rtol=1e-5, atol=1e-5), (loss_9, ref_9)

    # Non-128-multiple H*W -> 3-D fallback, with a masked tail (NC=6, block_rows=4).
    o2 = jax.random.normal(jax.random.fold_in(key, 7), (2, 3, 5, 7), dtype=jnp.float32)
    i2 = jax.random.normal(jax.random.fold_in(key, 8), (2, 3, 5, 7), dtype=jnp.float32)
    loss_3d = jax.block_until_ready(recons_loss_x(o2, i2, edge_recons=True, block_rows=4))
    ref_3d = jax.block_until_ready(_reference_loss(o2, i2, edge_recons=True))
    assert jnp.allclose(loss_3d, ref_3d, rtol=1e-5, atol=1e-5), (loss_3d, ref_3d)

    print("KERNEL_OK")
</pallas_src>

<mosaic_0001>
module attributes {stable_mosaic.version = 11 : i64} {
  func.func @_recons_flat_kernel(%arg0: i32, %arg1: memref<8x256xf32, #tpu.memory_space<vmem>>, %arg2: memref<8x256xf32, #tpu.memory_space<vmem>>, %arg3: memref<1x8x128xf32, #tpu.memory_space<vmem>>) attributes {dimension_semantics = [#tpu.dimension_semantics<parallel>], iteration_bounds = array<i64: 1>, scalar_prefetch = 0 : i64, scratch_operands = 0 : i64, tpu.core_type = #tpu.core_type<tc>, window_params = [{transform_indices = @transform_0, window_bounds = array<i64: 8, 256>}, {transform_indices = @transform_1, window_bounds = array<i64: 8, 256>}, {transform_indices = @transform_2, window_bounds = array<i64: 1, 8, 128>}]} {
    %c0 = arith.constant 0 : index
    %c0_0 = arith.constant 0 : index
    %0 = vector.load %arg1[%c0, %c0_0] : memref<8x256xf32, #tpu.memory_space<vmem>>, vector<8x256xf32>
    %c0_1 = arith.constant 0 : index
    %c0_2 = arith.constant 0 : index
    %1 = vector.load %arg2[%c0_1, %c0_2] : memref<8x256xf32, #tpu.memory_space<vmem>>, vector<8x256xf32>
    %2 = arith.subf %0, %1 : vector<8x256xf32>
    %3 = arith.mulf %2, %2 : vector<8x256xf32>
    %cst = arith.constant 4.8828125E-4 : f32
    %4 = vector.broadcast %cst : f32 to vector<8x256xf32>
    %5 = arith.mulf %3, %4 : vector<8x256xf32>
    %6 = tpu.iota {dimensions = array<i32: 1>} : vector<1x256xi32>
    %c16_i32 = arith.constant 16 : i32
    %c0_i32 = arith.constant 0 : i32
    %7 = arith.cmpi eq, %c16_i32, %c0_i32 : i32
    %c1_i32 = arith.constant 1 : i32
    %8 = arith.select %7, %c1_i32, %c16_i32 : i32
    %9 = vector.broadcast %8 : i32 to vector<1x256xi32>
    %10 = arith.remsi %6, %9 : vector<1x256xi32>
    %c0_i32_3 = arith.constant 0 : i32
    %11 = vector.broadcast %c0_i32_3 : i32 to vector<1x256xi32>
    %12 = arith.cmpi ne, %10, %11 : vector<1x256xi32>
    %c0_i32_4 = arith.constant 0 : i32
    %13 = vector.broadcast %c0_i32_4 : i32 to vector<1x256xi32>
    %14 = arith.cmpi slt, %10, %13 : vector<1x256xi32>
    %c0_i32_5 = arith.constant 0 : i32
    %15 = arith.cmpi slt, %8, %c0_i32_5 : i32
    %16 = vector.broadcast %15 : i1 to vector<1x256xi1>
    %17 = vector.broadcast %16 : vector<1x256xi1> to vector<1x256xi1>
    %18 = arith.xori %14, %17 : vector<1x256xi1>
    %19 = arith.andi %18, %12 : vector<1x256xi1>
    %20 = vector.broadcast %8 : i32 to vector<1x256xi32>
    %21 = arith.addi %10, %20 : vector<1x256xi32>
    %22 = arith.select %19, %21, %10 : vector<1x256xi1>, vector<1x256xi32>
    %c0_i32_6 = arith.constant 0 : i32
    %23 = vector.broadcast %c0_i32_6 : i32 to vector<1x256xi32>
    %24 = arith.cmpi ne, %22, %23 : vector<1x256xi32>
    %cst_7 = arith.constant 5.2083336E-4 : f32
    %cst_8 = arith.constant 0.000000e+00 : f32
    %25 = vector.broadcast %cst_7 : f32 to vector<1x256xf32>
    %26 = vector.broadcast %cst_8 : f32 to vector<1x256xf32>
    %27 = arith.select %24, %25, %26 : vector<1x256xi1>, vector<1x256xf32>
    %c16_i32_9 = arith.constant 16 : i32
    %28 = vector.broadcast %c16_i32_9 : i32 to vector<1x256xi32>
    %29 = arith.cmpi sge, %6, %28 : vector<1x256xi32>
    %cst_10 = arith.constant 5.2083336E-4 : f32
    %cst_11 = arith.constant 0.000000e+00 : f32
    %30 = vector.broadcast %cst_10 : f32 to vector<1x256xf32>
    %31 = vector.broadcast %cst_11 : f32 to vector<1x256xf32>
    %32 = arith.select %29, %30, %31 : vector<1x256xi1>, vector<1x256xf32>
    %c1_i32_12 = arith.constant 1 : i32
    %33 = tpu.dynamic_rotate %2 by %c1_i32_12 dim 1 : vector<8x256xf32>, i32 -> vector<8x256xf32>
    %34 = arith.subf %2, %33 : vector<8x256xf32>
    %c16_i32_13 = arith.constant 16 : i32
    %35 = tpu.dynamic_rotate %2 by %c16_i32_13 dim 1 : vector<8x256xf32>, i32 -> vector<8x256xf32>
    %36 = arith.subf %2, %35 : vector<8x256xf32>
    %37 = arith.mulf %36, %36 : vector<8x256xf32>
    %38 = vector.broadcast %32 : vector<1x256xf32> to vector<8x256xf32>
    %39 = arith.mulf %37, %38 : vector<8x256xf32>
    %40 = arith.addf %5, %39 : vector<8x256xf32>
    %41 = arith.mulf %34, %34 : vector<8x256xf32>
    %42 = vector.broadcast %27 : vector<1x256xf32> to vector<8x256xf32>
    %43 = arith.mulf %41, %42 : vector<8x256xf32>
    %44 = arith.addf %40, %43 : vector<8x256xf32>
    %45 = vector.shape_cast %44 : vector<8x256xf32> to vector<1x8x256xf32>
    %cst_14 = arith.constant dense<0.000000e+00> : vector<1xf32>
    %46 = vector.multi_reduction <add>, %45, %cst_14 [1, 2] : vector<1x8x256xf32> to vector<1xf32>
    %47 = vector.shape_cast %46 : vector<1xf32> to vector<1x1x1xf32>
    %48 = vector.extract %47[0, 0, 0] : f32 from vector<1x1x1xf32>
    %49 = vector.broadcast %48 : f32 to vector<1x8x128xf32>
    %c0_15 = arith.constant 0 : index
    %c0_16 = arith.constant 0 : index
    %c0_17 = arith.constant 0 : index
    %50 = vector.load %arg3[%c0_15, %c0_16, %c0_17] : memref<1x8x128xf32, #tpu.memory_space<vmem>>, vector<1x8x128xf32>
    tpu.vector_store %arg3[%c0_15, %c0_16, %c0_17], %49 {strides = array<i32>} : memref<1x8x128xf32, #tpu.memory_space<vmem>>, vector<1x8x128xf32>,
    return
  }
  func.func @transform_0(%arg0: i32) -> (i32, i32) {
    %c0_i32 = arith.constant 0 : i32
    %c0_i32_0 = arith.constant 0 : i32
    return %arg0, %c0_i32 : i32, i32
  }
  func.func @transform_1(%arg0: i32) -> (i32, i32) {
    %c0_i32 = arith.constant 0 : i32
    %c0_i32_0 = arith.constant 0 : i32
    return %arg0, %c0_i32 : i32, i32
  }
  func.func @transform_2(%arg0: i32) -> (i32, i32, i32) {
    %c0_i32 = arith.constant 0 : i32
    %c0_i32_0 = arith.constant 0 : i32
    %c0_i32_1 = arith.constant 0 : i32
    return %arg0, %c0_i32, %c0_i32_0 : i32, i32, i32
  }
}

</mosaic_0001>

<bundles_post_ra>
// kernel: tpu_custom_call.1
= control target key start
LH: loop header
LB: loop body
LE: loop exit
PB: predicated region body
PF: predicated region fallthrough
CT: control target
= control target key end

     0   :  { %7 = vsyncpa [#allocation3], 0  ;;  %s273_s0 = inlined_call_operand.hbm [shape: f32[8,256], index: 0, kind: input, shape index: {}]   ;;  %s274_s1 = inlined_call_operand.hbm [shape: f32[8,256], index: 1, kind: input, shape index: {}]   ;;  %s275_s2 = inlined_call_operand.hbm [shape: f32[1,8,128], index: 2, kind: output, shape index: {}]  }
   0x1   :  { %8 = vsyncpa [#allocation6], 0 }
   0x2   :  { %9 = vsyncpa [#allocation4], 0  ;;  %s15_s11 = sshll.u32 %s273_s0, 4  ;;  %s231_s12 = smov [#allocation2]   ;;  %s16_s11 = int_to_ptr.hbm [resolvable:$true] %s15_s11 }
   0x3   :  { %s17_s13 = sshll.u32 %s231_s12, 4  ;;  %s26_s16 = sshll.u32 %s274_s1, 4  ;;  %s18_s13 = int_to_ptr.vmem [resolvable:$true] %s17_s13  ;;  %s27_s16 = int_to_ptr.hbm [resolvable:$true] %s26_s16 }
   0x4   :  { %20 = dma.hbm_to_vmem [thread:$0]  %s16_s11, 256, %s18_s13, [#allocation3]  }
   0x5   :  { %s232_s17 = smov [#allocation5]  }
   0x6   :  { %s28_s18 = sshll.u32 %s232_s17, 4  ;;  %s29_s18 = int_to_ptr.vmem [resolvable:$true] %s28_s18 }
   0x7   :  { %31 = dma.hbm_to_vmem [thread:$0]  %s27_s16, 256, %s29_s18, [#allocation6]  }
   0x8   :  { %225 = dma.done.wait [#allocation3], 256  }
   0x9   :  { %226 = vsyncadd [#allocation3], 4294967040 }
   0xa   :  { %227 = dma.done.wait [#allocation6], 256  }
   0xb   :  { %228 = vsyncadd [#allocation6], 4294967040  ;;  %v40_v0 = vld [vmem:[#allocation2] sm:$0xff]  ;;  %v42_v1 = vld [vmem:[#allocation5] sm:$0xff]  ;;  %s233_s0 = smov 1   ;;  %s234_s19 = smov 16   ;;  %v50_v6 = vlaneseq }
   0xc   :  { %v44_v2 = vsub.f32 %v40_v0, %v42_v1  ;;  %v41_v3 = vld [vmem:[#allocation2 + $0x8] sm:$0xff]  ;;  %v43_v4 = vld [vmem:[#allocation5 + $0x8] sm:$0xff]  ;;  %v235_v27 = vmov 0.0   ;;  %s236_s1 = smov [#allocation7]   ;;  %s134_s23 = sshll.u32 %s275_s2, 4  ;;  %s135_s23 = int_to_ptr.hbm [resolvable:$true] %s134_s23 }
   0xd   :  { %v45_v5 = vsub.f32 %v41_v3, %v43_v4  ;;  %v51_v7 = vand.u32 127, %v50_v6  ;;  %s132_s20 = sshll.u32 %s236_s1, 4  ;;  %s133_s20 = int_to_ptr.vmem [resolvable:$true] %s132_s20 }
   0xe   :  { %85 = vrot.lane.b32.xlu1 %v44_v2, %s233_s0  ;;  %94 = vrot.lane.b32.xlu0 %v44_v2, %s234_s19  ;;  %v46_v13 = vmul.f32 %v44_v2, %v44_v2 }
   0xf   :  { %v52_v10 = vadd.s32 128, %v51_v7  ;;  %v57_v11 = vand.u32 15, %v51_v7  ;;  %vm89_vm0 = vcmp.lt.s32.totalorder %v51_v7, 1  ;;  %vm98_vm1 = vcmp.lt.s32.totalorder %v51_v7, 16 }
  0x10   :  { %v47_v14 = vmul.f32 %v45_v5, %v45_v5  ;;  %vm81_vm2 = vcmp.ge.s32.totalorder %v51_v7, 16  ;;  %v48_v29 = vmul.f32 0.00048828125, %v46_v13 }
  0x11   :  { %v64_v12 = vand.u32 15, %v52_v10  ;;  %vm258_vm3 = vcmp.ne.s32.totalorder %v57_v11, 0  ;;  %v83_v28 = vsel %vm81_vm2, 0.00052083336, %v235_v27 }
  0x12   :  { %v49_v30 = vmul.f32 0.00048828125, %v47_v14  ;;  %v79_v35 = vsel %vm258_vm3, 0.00052083336, %v235_v27 }
  0x13   :  { %vm262_vm4 = vcmp.ne.s32.totalorder %v64_v12, 0 }
  0x14   :  { %v80_v36 = vsel %vm262_vm4, 0.00052083336, %v235_v27 }
  0x16   :  { %87 = vrot.lane.b32.xlu1 %v45_v5, %s233_s0  ;;  %96 = vrot.lane.b32.xlu0 %v45_v5, %s234_s19 }
  0x80   :  { %v86_v8 = vpop.permute.xlu1 %85  ;;  %v95_v9 = vpop.permute.xlu0 %94 }
  0x88   :  { %v88_v15 = vpop.permute.xlu1 %87  ;;  %v97_v16 = vpop.permute.xlu0 %96 }
  0x89   :  { %v90_v19 = vsel %vm89_vm0, %v86_v8, %v88_v15  ;;  %v91_v20 = vsel %vm89_vm0, %v88_v15, %v86_v8  ;;  %v99_v21 = vsel %vm98_vm1, %v95_v9, %v97_v16  ;;  %v100_v22 = vsel %vm98_vm1, %v97_v16, %v95_v9 }
  0x8a   :  { %v92_v23 = vsub.f32 %v44_v2, %v91_v20  ;;  %v93_v24 = vsub.f32 %v45_v5, %v90_v19  ;;  %v101_v25 = vsub.f32 %v44_v2, %v100_v22  ;;  %v102_v26 = vsub.f32 %v45_v5, %v99_v21 }
  0x8c   :  { %v109_v31 = vmul.f32 %v92_v23, %v92_v23  ;;  %v110_v32 = vmul.f32 %v93_v24, %v93_v24  ;;  %v103_v33 = vmul.f32 %v101_v25, %v101_v25  ;;  %v104_v34 = vmul.f32 %v102_v26, %v102_v26 }
  0x8e   :  { %v105_v37 = vmul.f32 %v103_v33, %v83_v28  ;;  %v106_v38 = vmul.f32 0.00052083336, %v104_v34  ;;  %v111_v41 = vmul.f32 %v109_v31, %v79_v35  ;;  %v112_v42 = vmul.f32 %v110_v32, %v80_v36 }
  0x90   :  { %v107_v39 = vadd.f32 %v105_v37, %v48_v29  ;;  %v108_v40 = vadd.f32 %v106_v38, %v49_v30 }
  0x92   :  { %v113_v43 = vadd.f32 %v111_v41, %v107_v39  ;;  %v114_v44 = vadd.f32 %v112_v42, %v108_v40 }
  0x94   :  { %v115_v45 = vadd.f32 %v114_v44, %v113_v43 }
  0x96   :  { %116 = vadd.xlane.f32.xlu2 %v115_v45 }
 0x109   :  { %v117_v46 = vpop.xlane.xlu2 %116 }
 0x10a   :  { %v118_v47 = vrot.slane %v117_v46, 4 }
 0x10c   :  { %v119_v48 = vadd.f32 %v118_v47, %v117_v46 }
 0x10e   :  { %v120_v49 = vrot.slane %v119_v48, 2 }
 0x110   :  { %v121_v50 = vadd.f32 %v120_v49, %v119_v48 }
 0x112   :  { %v122_v51 = vrot.slane %v121_v50, 1 }
 0x114   :  { %v123_v52 = vadd.f32 %v122_v51, %v121_v50 }
 0x116   :  { %145 = vpush %v123_v52 }
 0x147   :  { %s146_s24 = spop %145 }
 0x148   :  { %v125_v53 = vstv %s146_s24 }
 0x149   :  { %126 = vst [vmem:[#allocation7] sm:$0xff] %v125_v53 }
 0x14a   :  { %137 = dma.vmem_to_hbm [thread:$0]  %s133_s20, 128, %s135_s23, [#allocation4]  }
 0x14b   :  { %229 = dma.done.wait [#allocation4], 128  }
 0x14c   :  { %230 = vsyncadd [#allocation4], 4294967168 }
 0x14d   :  { %142 = vsyncpa [#allocation3], 1 }
 0x14e   :  { %143 = vsyncpa [#allocation6], 1 }
 0x14f   :  { %144 = vsyncpa [#allocation4], 1 }

</bundles_post_ra>
